<compile_context>
chip_gen: v6e
topology: v6e:2x2x1
jax: 0.10.0
libtpu: 0.0.40
codegen_flags: <defaults>
</compile_context>

<pallas_src>
import jax
import jax.numpy as jnp
from jax.experimental import pallas as pl
from jax.experimental.pallas import tpu as pltpu


def patch_merging_kernel(x_ref, xh_ref, w1_ref, b1_ref, w2_ref, b2_ref,
                         w3_ref, b3_ref, out_ref):
    # x_ref  : (2*TH, W2, 2*Cin)  column-pair-packed NHWC strip of one image
    # xh_ref : (1, W2, 2*Cin)     row 2*TH*s - 1 (clamped; masked at strip 0)
    # out_ref: (TH*W2, Cout)
    TH2, W2, Cin2 = x_ref.shape
    TH = TH2 // 2
    Cin = Cin2 // 2
    Cout = out_ref.shape[-1]
    f32 = jnp.float32
    cdt = x_ref.dtype

    w1 = w1_ref[...]                     # (Cin, Cout) compute dtype
    b1 = b1_ref[...]                     # (1, Cout)   f32

    def conv1(x2d):                      # 1x1 conv + fused BN + ReLU (f32 accum)
        return jnp.maximum(jnp.dot(x2d, w1, preferred_element_type=f32) + b1, 0.0)

    # ---- conv1: even / odd input columns are contiguous lane slices thanks to
    # the (W2, 2*Cin) packing -> one MXU dot per column parity.
    x = x_ref[...]
    y_e = conv1(x[..., :Cin].reshape(TH2 * W2, Cin)).reshape(TH, 2, W2, Cout)
    y_o = conv1(x[..., Cin:].reshape(TH2 * W2, Cin)).reshape(TH, 2, W2, Cout)
    # y_*[:, 0] = even local rows, y_*[:, 1] = odd local rows (f32).

    # Halo: conv1 of the last row of the strip above (recomputed -> no carry,
    # strip axis fully parallel). At the image top this row is the zero padding
    # of conv1's *output*, so mask the conv1 result, not the input.
    not_top = (pl.program_id(1) > 0).astype(f32)
    xh = xh_ref[...].reshape(W2, Cin2)
    yh_e = conv1(xh[:, :Cin]) * not_top                    # (W2, Cout)
    yh_o = conv1(xh[:, Cin:]) * not_top

    # ---- conv2: 3x3 depthwise, stride 2, pad 1 (+BN +ReLU), all on values.
    # Padded-row selections for output row a: rows 2a (r0), 2a+1 (r1), 2a+2 (r2).
    if TH > 1:
        r0_e = jnp.concatenate([yh_e[None], y_e[:TH - 1, 1]], axis=0)
        r0_o = jnp.concatenate([yh_o[None], y_o[:TH - 1, 1]], axis=0)
    else:
        r0_e, r0_o = yh_e[None], yh_o[None]
    r1_e, r1_o = y_e[:, 0], y_o[:, 0]
    r2_e, r2_o = y_e[:, 1], y_o[:, 1]

    w2 = w2_ref[...]                     # (9, Cout) f32, row = di*3 + dj
    center = r0_e * w2[1] + r1_e * w2[4] + r2_e * w2[7]    # col 2b   (dj=1)
    right = r0_o * w2[2] + r1_o * w2[5] + r2_o * w2[8]     # col 2b+1 (dj=2)
    left_s = r0_o * w2[0] + r1_o * w2[3] + r2_o * w2[6]    # col 2b-1 before shift
    zcol = jnp.zeros((TH, 1, Cout), f32)
    if W2 > 1:
        left = jnp.concatenate([zcol, left_s[:, :W2 - 1, :]], axis=1)
    else:
        left = zcol
    y2 = jnp.maximum(center + right + left + b2_ref[...], 0.0)   # (TH, W2, Cout)

    # ---- conv3: 1x1 conv + fused BN; row-major (TH, W2) flatten matches
    # x.flatten(2).transpose(1, 2) within this strip's output block.
    y3 = jnp.dot(y2.reshape(TH * W2, Cout).astype(cdt), w3_ref[...],
                 preferred_element_type=f32) + b3_ref[...]
    out_ref[...] = y3.astype(out_ref.dtype)


def _pick_strip_rows(H2, W2, Cin, Cout, itemsize, budget_bytes=12 << 20):
    """Largest divisor of H2 whose per-strip working set fits the VMEM budget.

    Falls back to a single strip for small images or when W2 is not a multiple
    of 8 (keeps the flattened (TH*W2, Cout) output block sublane-aligned)."""
    if H2 <= 16 or W2 % 8 != 0:
        return H2

    def strip_bytes(th):
        return (2 * (2 * th) * W2 * 2 * Cin * itemsize   # input strip (x2 bufs)
                + 2 * th * W2 * Cout * itemsize          # output block (x2 bufs)
                + 10 * th * W2 * Cout * 4)               # f32 conv1 / tap temporaries

    for th in range(H2, 0, -1):
        if H2 % th == 0 and strip_bytes(th) <= budget_bytes:
            return th
    return 1


def init_params(key, dim, out_dim, eps=1e-5):
    """Deterministic synthetic parameters; BatchNorm (eval-mode, __init__ stats:
    weight=1, bias=0, running_mean=0, running_var=1) fused into the convs."""
    k1, k2, k3 = jax.random.split(key, 3)
    conv1_w = jax.random.normal(k1, (out_dim, dim, 1, 1), jnp.float32) * 0.2
    conv2_w = jax.random.normal(k2, (out_dim, 1, 3, 3), jnp.float32) * 0.2   # depthwise
    conv3_w = jax.random.normal(k3, (out_dim, out_dim, 1, 1), jnp.float32) * 0.2

    def bn(c):
        return (jnp.ones((c,), jnp.float32), jnp.zeros((c,), jnp.float32),
                jnp.zeros((c,), jnp.float32), jnp.ones((c,), jnp.float32))

    def fuse_pw(w, c):                                     # w: (Co, Ci, 1, 1)
        g, b, m, v = bn(c)
        s = g / jnp.sqrt(v + eps)
        return (w[:, :, 0, 0] * s[:, None]).T, (b - m * s)[None, :]  # (Ci,Co), (1,Co)

    def fuse_dw(w, c):                                     # w: (Co, 1, 3, 3)
        g, b, m, v = bn(c)
        s = g / jnp.sqrt(v + eps)
        wf = w[:, 0, :, :] * s[:, None, None]              # (Co, 3, 3)
        wf = jnp.transpose(wf, (1, 2, 0)).reshape(9, c)    # (9, Co), row = di*3+dj
        return wf, (b - m * s)[None, :]

    w1f, b1f = fuse_pw(conv1_w, out_dim)
    w2f, b2f = fuse_dw(conv2_w, out_dim)
    w3f, b3f = fuse_pw(conv3_w, out_dim)
    return dict(w1f=w1f, b1f=b1f, w2f=w2f, b2f=b2f, w3f=w3f, b3f=b3f, out_dim=out_dim)


def patch_merging_forward(x, params, input_resolution, *, compute_dtype=None,
                          strip_rows=None):
    H, W = input_resolution
    if x.ndim == 3:                                        # (B, H*W, C) token input
        B = x.shape[0]
        assert x.shape[1] == H * W
        Cin = x.shape[-1]
        x_nhwc = x.reshape(B, H, W, Cin)                   # pure reshape, no relayout
    else:                                                  # PyTorch NCHW
        B, Cin = x.shape[0], x.shape[1]
        x_nhwc = jnp.transpose(x, (0, 2, 3, 1))            # single NCHW->NHWC relayout
    assert H % 2 == 0 and W % 2 == 0, "even spatial dims expected for stride-2 merge"
    out_dim = params["out_dim"]
    H2, W2 = H // 2, W // 2

    cdt = jnp.dtype(compute_dtype or x_nhwc.dtype)
    TH = strip_rows or _pick_strip_rows(H2, W2, Cin, out_dim, cdt.itemsize)
    assert H2 % TH == 0
    n_s = H2 // TH

    # Pack adjacent column pairs into the channel dim (free, metadata-only
    # reshape) so the in-kernel column-parity split is a cheap lane slice.
    x_packed = x_nhwc.astype(cdt).reshape(B, H, W2, 2 * Cin)

    w1 = params["w1f"].astype(cdt)
    w3 = params["w3f"].astype(cdt)
    b1 = params["b1f"].astype(jnp.float32)
    w2 = params["w2f"].astype(jnp.float32)
    b2 = params["b2f"].astype(jnp.float32)
    b3 = params["b3f"].astype(jnp.float32)

    # Scoped-VMEM limit sized from the actual block set, clamped to [32, 64] MiB
    # so it is valid on v7x (64 MiB physical) as well as v5e / v6e.
    isz = cdt.itemsize
    est = (2 * (2 * TH) * W2 * 2 * Cin * isz               # input strip (x2 buffers)
           + 2 * W2 * 2 * Cin * isz                        # halo row (x2 buffers)
           + 2 * TH * W2 * out_dim * isz                   # output block (x2 buffers)
           + 10 * TH * W2 * out_dim * 4                    # f32 conv1 / tap temporaries
           + (Cin + out_dim + 12) * out_dim * 4)           # weights / biases
    vmem_limit = int(min(max(2 * est, 32 << 20), 64 << 20))

    full = lambda shape: pl.BlockSpec(shape, lambda b, s: (0,) * len(shape))
    out = pl.pallas_call(
        patch_merging_kernel,
        out_shape=jax.ShapeDtypeStruct((B, H2 * W2, out_dim), cdt),
        grid_spec=pltpu.PrefetchScalarGridSpec(
            num_scalar_prefetch=0,
            grid=(B, n_s),
            in_specs=[
                # strip of 2*TH input rows (column-pair packed)
                pl.BlockSpec((None, 2 * TH, W2, 2 * Cin), lambda b, s: (b, s, 0, 0)),
                # 1-row halo: last row of the strip above (clamped at the top)
                pl.BlockSpec((None, 1, W2, 2 * Cin),
                             lambda b, s: (b, jnp.maximum(2 * TH * s - 1, 0), 0, 0)),
                full((Cin, out_dim)),      # w1f
                full((1, out_dim)),        # b1f
                full((9, out_dim)),        # w2f
                full((1, out_dim)),        # b2f
                full((out_dim, out_dim)),  # w3f
                full((1, out_dim)),        # b3f
            ],
            out_specs=pl.BlockSpec((None, TH * W2, out_dim), lambda b, s: (b, s, 0)),
        ),
        compiler_params=pltpu.CompilerParams(
            dimension_semantics=("parallel", "parallel"),
            vmem_limit_bytes=vmem_limit,
        ),
    )(x_packed, x_packed, w1, b1, w2, b2, w3, b3)
    return out


def reference_forward(x_nchw, p):
    """Plain-JAX replica of the PyTorch forward (eval-mode BN fused identically)."""
    x = jnp.transpose(x_nchw, (0, 2, 3, 1))
    y = jnp.einsum("bhwc,cd->bhwd", x, p["w1f"]) + p["b1f"][0]
    y = jnp.maximum(y, 0.0)
    yp = jnp.pad(y, ((0, 0), (1, 1), (1, 1), (0, 0)))
    B, Hp, Wp, C = yp.shape
    H2, W2 = (Hp - 3) // 2 + 1, (Wp - 3) // 2 + 1
    acc = jnp.zeros((B, H2, W2, C), jnp.float32)
    for di in range(3):
        for dj in range(3):
            acc = acc + yp[:, di:di + 2 * H2:2, dj:dj + 2 * W2:2, :] * p["w2f"][di * 3 + dj]
    y2 = jnp.maximum(acc + p["b2f"][0], 0.0)
    y3 = jnp.einsum("bhwc,cd->bhwd", y2, p["w3f"]) + p["b3f"][0]
    return y3.reshape(B, H2 * W2, C)


if __name__ == "__main__":
    key = jax.random.PRNGKey(0)
    B, Cin, H, W = 2, 4, 16, 16
    out_dim = 8
    kx, kp = jax.random.split(key)
    x = jax.random.normal(kx, (B, Cin, H, W), jnp.float32)
    params = init_params(kp, Cin, out_dim)

    # f32 path, PyTorch NCHW input.
    out = patch_merging_forward(x, params, (H, W))
    out = jax.block_until_ready(out)
    ref = reference_forward(x, params)
    assert out.shape == (B, (H // 2) * (W // 2), out_dim), out.shape
    if not jnp.allclose(out, ref, rtol=5e-3, atol=5e-3):
        err = float(jnp.max(jnp.abs(out - ref)))
        raise AssertionError(f"f32 Pallas PatchMerging mismatch (max abs err {err})")

    # bf16 inference path, token-form (B, H*W, C) input — the layout PatchMerging
    # actually receives inside TinyViT; no wrapper relayout at all in this case.
    x_tok = jnp.transpose(x, (0, 2, 3, 1)).reshape(B, H * W, Cin).astype(jnp.bfloat16)
    out_bf16 = patch_merging_forward(x_tok, params, (H, W))
    out_bf16 = jax.block_until_ready(out_bf16)
    params_bf16 = dict(params,
                       w1f=params["w1f"].astype(jnp.bfloat16).astype(jnp.float32),
                       w3f=params["w3f"].astype(jnp.bfloat16).astype(jnp.float32))
    ref_bf16 = reference_forward(x.astype(jnp.bfloat16).astype(jnp.float32), params_bf16)
    if not jnp.allclose(out_bf16.astype(jnp.float32), ref_bf16, rtol=5e-2, atol=5e-2):
        raise AssertionError("bf16 Pallas PatchMerging output deviates from reference")

    print("KERNEL_OK")
</pallas_src>

<mosaic_0001>
module attributes {stable_mosaic.version = 11 : i64} {
  func.func @patch_merging_kernel(%arg0: i32, %arg1: i32, %arg2: memref<1x16x8x8xf32, #tpu.memory_space<vmem>>, %arg3: memref<1x1x8x8xf32, #tpu.memory_space<vmem>>, %arg4: memref<4x8xf32, #tpu.memory_space<vmem>>, %arg5: memref<1x8xf32, #tpu.memory_space<vmem>>, %arg6: memref<9x8xf32, #tpu.memory_space<vmem>>, %arg7: memref<1x8xf32, #tpu.memory_space<vmem>>, %arg8: memref<8x8xf32, #tpu.memory_space<vmem>>, %arg9: memref<1x8xf32, #tpu.memory_space<vmem>>, %arg10: memref<1x64x8xf32, #tpu.memory_space<vmem>>) attributes {dimension_semantics = [#tpu.dimension_semantics<parallel>, #tpu.dimension_semantics<parallel>], iteration_bounds = array<i64: 2, 1>, scalar_prefetch = 0 : i64, scratch_operands = 0 : i64, tpu.core_type = #tpu.core_type<tc>, window_params = [{transform_indices = @transform_0, window_bounds = array<i64: 1, 16, 8, 8>}, {transform_indices = @transform_1, window_bounds = array<i64: 1, 1, 8, 8>}, {pipeline_mode = #tpu.pipeline_mode<synchronous>, transform_indices = @transform_2, window_bounds = array<i64: 4, 8>}, {pipeline_mode = #tpu.pipeline_mode<synchronous>, transform_indices = @transform_3, window_bounds = array<i64: 1, 8>}, {pipeline_mode = #tpu.pipeline_mode<synchronous>, transform_indices = @transform_4, window_bounds = array<i64: 9, 8>}, {pipeline_mode = #tpu.pipeline_mode<synchronous>, transform_indices = @transform_5, window_bounds = array<i64: 1, 8>}, {pipeline_mode = #tpu.pipeline_mode<synchronous>, transform_indices = @transform_6, window_bounds = array<i64: 8, 8>}, {pipeline_mode = #tpu.pipeline_mode<synchronous>, transform_indices = @transform_7, window_bounds = array<i64: 1, 8>}, {transform_indices = @transform_8, window_bounds = array<i64: 1, 64, 8>}]} {
    %c0 = arith.constant 0 : index
    %c0_0 = arith.constant 0 : index
    %0 = vector.load %arg4[%c0, %c0_0] : memref<4x8xf32, #tpu.memory_space<vmem>>, vector<4x8xf32>
    %c0_1 = arith.constant 0 : index
    %c0_2 = arith.constant 0 : index
    %1 = vector.load %arg5[%c0_1, %c0_2] : memref<1x8xf32, #tpu.memory_space<vmem>>, vector<1x8xf32>
    %c0_3 = arith.constant 0 : index
    %c0_4 = arith.constant 0 : index
    %c0_5 = arith.constant 0 : index
    %c0_6 = arith.constant 0 : index
    %2 = vector.load %arg2[%c0_3, %c0_4, %c0_5, %c0_6] : memref<1x16x8x8xf32, #tpu.memory_space<vmem>>, vector<1x16x8x8xf32>
    %3 = vector.shape_cast %2 : vector<1x16x8x8xf32> to vector<16x8x8xf32>
    %4 = vector.extract_strided_slice %3 {offsets = [0, 0, 0], sizes = [16, 8, 4], strides = [1, 1, 1]} : vector<16x8x8xf32> to vector<16x8x4xf32>
    %5 = vector.shape_cast %4 : vector<16x8x4xf32> to vector<128x4xf32>
    %cst = arith.constant dense<0.000000e+00> : vector<128x8xf32>
    %6 = tpu.matmul %5, %0, %cst {dimension_numbers = #tpu.dot_dimension_numbers<[1], [0], [0], [1], [0, 0, 1, 1], [], []>} : vector<128x4xf32>, vector<4x8xf32>, vector<128x8xf32> -> vector<128x8xf32>
    %7 = vector.broadcast %1 : vector<1x8xf32> to vector<128x8xf32>
    %8 = arith.addf %6, %7 : vector<128x8xf32>
    %cst_7 = arith.constant 0.000000e+00 : f32
    %9 = vector.broadcast %cst_7 : f32 to vector<128x8xf32>
    %10 = arith.maximumf %8, %9 : vector<128x8xf32>
    %11 = vector.shape_cast %10 : vector<128x8xf32> to vector<8x2x8x8xf32>
    %12 = vector.extract_strided_slice %3 {offsets = [0, 0, 4], sizes = [16, 8, 4], strides = [1, 1, 1]} : vector<16x8x8xf32> to vector<16x8x4xf32>
    %13 = vector.shape_cast %12 : vector<16x8x4xf32> to vector<128x4xf32>
    %cst_8 = arith.constant dense<0.000000e+00> : vector<128x8xf32>
    %14 = tpu.matmul %13, %0, %cst_8 {dimension_numbers = #tpu.dot_dimension_numbers<[1], [0], [0], [1], [0, 0, 1, 1], [], []>} : vector<128x4xf32>, vector<4x8xf32>, vector<128x8xf32> -> vector<128x8xf32>
    %15 = vector.broadcast %1 : vector<1x8xf32> to vector<128x8xf32>
    %16 = arith.addf %14, %15 : vector<128x8xf32>
    %cst_9 = arith.constant 0.000000e+00 : f32
    %17 = vector.broadcast %cst_9 : f32 to vector<128x8xf32>
    %18 = arith.maximumf %16, %17 : vector<128x8xf32>
    %19 = vector.shape_cast %18 : vector<128x8xf32> to vector<8x2x8x8xf32>
    %c0_i32 = arith.constant 0 : i32
    %20 = arith.cmpi sgt, %arg1, %c0_i32 : i32
    %21 = arith.extui %20 : i1 to i32
    %22 = arith.sitofp %21 : i32 to f32
    %c0_10 = arith.constant 0 : index
    %c0_11 = arith.constant 0 : index
    %c0_12 = arith.constant 0 : index
    %c0_13 = arith.constant 0 : index
    %23 = vector.load %arg3[%c0_10, %c0_11, %c0_12, %c0_13] : memref<1x1x8x8xf32, #tpu.memory_space<vmem>>, vector<1x1x8x8xf32>
    %24 = vector.shape_cast %23 : vector<1x1x8x8xf32> to vector<1x8x8xf32>
    %25 = vector.shape_cast %24 : vector<1x8x8xf32> to vector<8x8xf32>
    %26 = vector.extract_strided_slice %25 {offsets = [0, 0], sizes = [8, 4], strides = [1, 1]} : vector<8x8xf32> to vector<8x4xf32>
    %cst_14 = arith.constant dense<0.000000e+00> : vector<8x8xf32>
    %27 = tpu.matmul %26, %0, %cst_14 {dimension_numbers = #tpu.dot_dimension_numbers<[1], [0], [0], [1], [0, 0, 1, 1], [], []>} : vector<8x4xf32>, vector<4x8xf32>, vector<8x8xf32> -> vector<8x8xf32>
    %28 = vector.broadcast %1 : vector<1x8xf32> to vector<8x8xf32>
    %29 = arith.addf %27, %28 : vector<8x8xf32>
    %cst_15 = arith.constant 0.000000e+00 : f32
    %30 = vector.broadcast %cst_15 : f32 to vector<8x8xf32>
    %31 = arith.maximumf %29, %30 : vector<8x8xf32>
    %32 = vector.broadcast %22 : f32 to vector<8x8xf32>
    %33 = arith.mulf %31, %32 : vector<8x8xf32>
    %34 = vector.extract_strided_slice %25 {offsets = [0, 4], sizes = [8, 4], strides = [1, 1]} : vector<8x8xf32> to vector<8x4xf32>
    %cst_16 = arith.constant dense<0.000000e+00> : vector<8x8xf32>
    %35 = tpu.matmul %34, %0, %cst_16 {dimension_numbers = #tpu.dot_dimension_numbers<[1], [0], [0], [1], [0, 0, 1, 1], [], []>} : vector<8x4xf32>, vector<4x8xf32>, vector<8x8xf32> -> vector<8x8xf32>
    %36 = vector.broadcast %1 : vector<1x8xf32> to vector<8x8xf32>
    %37 = arith.addf %35, %36 : vector<8x8xf32>
    %cst_17 = arith.constant 0.000000e+00 : f32
    %38 = vector.broadcast %cst_17 : f32 to vector<8x8xf32>
    %39 = arith.maximumf %37, %38 : vector<8x8xf32>
    %40 = vector.broadcast %22 : f32 to vector<8x8xf32>
    %41 = arith.mulf %39, %40 : vector<8x8xf32>
    %42 = vector.shape_cast %33 : vector<8x8xf32> to vector<1x8x8xf32>
    %43 = vector.extract_strided_slice %11 {offsets = [0, 1, 0, 0], sizes = [7, 1, 8, 8], strides = [1, 1, 1, 1]} : vector<8x2x8x8xf32> to vector<7x1x8x8xf32>
    %44 = vector.shape_cast %43 : vector<7x1x8x8xf32> to vector<7x8x8xf32>
    %45 = tpu.concatenate %42, %44 in 0 : vector<1x8x8xf32>, vector<7x8x8xf32> -> vector<8x8x8xf32>
    %46 = vector.shape_cast %41 : vector<8x8xf32> to vector<1x8x8xf32>
    %47 = vector.extract_strided_slice %19 {offsets = [0, 1, 0, 0], sizes = [7, 1, 8, 8], strides = [1, 1, 1, 1]} : vector<8x2x8x8xf32> to vector<7x1x8x8xf32>
    %48 = vector.shape_cast %47 : vector<7x1x8x8xf32> to vector<7x8x8xf32>
    %49 = tpu.concatenate %46, %48 in 0 : vector<1x8x8xf32>, vector<7x8x8xf32> -> vector<8x8x8xf32>
    %50 = vector.extract_strided_slice %11 {offsets = [0, 0, 0, 0], sizes = [8, 1, 8, 8], strides = [1, 1, 1, 1]} : vector<8x2x8x8xf32> to vector<8x1x8x8xf32>
    %51 = vector.shape_cast %50 : vector<8x1x8x8xf32> to vector<8x8x8xf32>
    %52 = vector.extract_strided_slice %19 {offsets = [0, 0, 0, 0], sizes = [8, 1, 8, 8], strides = [1, 1, 1, 1]} : vector<8x2x8x8xf32> to vector<8x1x8x8xf32>
    %53 = vector.shape_cast %52 : vector<8x1x8x8xf32> to vector<8x8x8xf32>
    %54 = vector.extract_strided_slice %11 {offsets = [0, 1, 0, 0], sizes = [8, 1, 8, 8], strides = [1, 1, 1, 1]} : vector<8x2x8x8xf32> to vector<8x1x8x8xf32>
    %55 = vector.shape_cast %54 : vector<8x1x8x8xf32> to vector<8x8x8xf32>
    %56 = vector.extract_strided_slice %19 {offsets = [0, 1, 0, 0], sizes = [8, 1, 8, 8], strides = [1, 1, 1, 1]} : vector<8x2x8x8xf32> to vector<8x1x8x8xf32>
    %57 = vector.shape_cast %56 : vector<8x1x8x8xf32> to vector<8x8x8xf32>
    %c0_18 = arith.constant 0 : index
    %c0_19 = arith.constant 0 : index
    %58 = vector.load %arg6[%c0_18, %c0_19] : memref<9x8xf32, #tpu.memory_space<vmem>>, vector<9x8xf32>
    %59 = vector.extract_strided_slice %58 {offsets = [1, 0], sizes = [1, 8], strides = [1, 1]} : vector<9x8xf32> to vector<1x8xf32>
    %60 = vector.shape_cast %59 : vector<1x8xf32> to vector<8xf32>
    %61 = vector.shape_cast %60 : vector<8xf32> to vector<1x1x8xf32>
    %62 = vector.broadcast %61 : vector<1x1x8xf32> to vector<8x8x8xf32>
    %63 = arith.mulf %45, %62 : vector<8x8x8xf32>
    %64 = vector.extract_strided_slice %58 {offsets = [4, 0], sizes = [1, 8], strides = [1, 1]} : vector<9x8xf32> to vector<1x8xf32>
    %65 = vector.shape_cast %64 : vector<1x8xf32> to vector<8xf32>
    %66 = vector.shape_cast %65 : vector<8xf32> to vector<1x1x8xf32>
    %67 = vector.broadcast %66 : vector<1x1x8xf32> to vector<8x8x8xf32>
    %68 = arith.mulf %51, %67 : vector<8x8x8xf32>
    %69 = arith.addf %63, %68 : vector<8x8x8xf32>
    %70 = vector.extract_strided_slice %58 {offsets = [7, 0], sizes = [1, 8], strides = [1, 1]} : vector<9x8xf32> to vector<1x8xf32>
    %71 = vector.shape_cast %70 : vector<1x8xf32> to vector<8xf32>
    %72 = vector.shape_cast %71 : vector<8xf32> to vector<1x1x8xf32>
    %73 = vector.broadcast %72 : vector<1x1x8xf32> to vector<8x8x8xf32>
    %74 = arith.mulf %55, %73 : vector<8x8x8xf32>
    %75 = arith.addf %69, %74 : vector<8x8x8xf32>
    %76 = vector.extract_strided_slice %58 {offsets = [2, 0], sizes = [1, 8], strides = [1, 1]} : vector<9x8xf32> to vector<1x8xf32>
    %77 = vector.shape_cast %76 : vector<1x8xf32> to vector<8xf32>
    %78 = vector.shape_cast %77 : vector<8xf32> to vector<1x1x8xf32>
    %79 = vector.broadcast %78 : vector<1x1x8xf32> to vector<8x8x8xf32>
    %80 = arith.mulf %49, %79 : vector<8x8x8xf32>
    %81 = vector.extract_strided_slice %58 {offsets = [5, 0], sizes = [1, 8], strides = [1, 1]} : vector<9x8xf32> to vector<1x8xf32>
    %82 = vector.shape_cast %81 : vector<1x8xf32> to vector<8xf32>
    %83 = vector.shape_cast %82 : vector<8xf32> to vector<1x1x8xf32>
    %84 = vector.broadcast %83 : vector<1x1x8xf32> to vector<8x8x8xf32>
    %85 = arith.mulf %53, %84 : vector<8x8x8xf32>
    %86 = arith.addf %80, %85 : vector<8x8x8xf32>
    %87 = vector.extract_strided_slice %58 {offsets = [8, 0], sizes = [1, 8], strides = [1, 1]} : vector<9x8xf32> to vector<1x8xf32>
    %88 = vector.shape_cast %87 : vector<1x8xf32> to vector<8xf32>
    %89 = vector.shape_cast %88 : vector<8xf32> to vector<1x1x8xf32>
    %90 = vector.broadcast %89 : vector<1x1x8xf32> to vector<8x8x8xf32>
    %91 = arith.mulf %57, %90 : vector<8x8x8xf32>
    %92 = arith.addf %86, %91 : vector<8x8x8xf32>
    %93 = vector.extract_strided_slice %58 {offsets = [0, 0], sizes = [1, 8], strides = [1, 1]} : vector<9x8xf32> to vector<1x8xf32>
    %94 = vector.shape_cast %93 : vector<1x8xf32> to vector<8xf32>
    %95 = vector.shape_cast %94 : vector<8xf32> to vector<1x1x8xf32>
    %96 = vector.broadcast %95 : vector<1x1x8xf32> to vector<8x8x8xf32>
    %97 = arith.mulf %49, %96 : vector<8x8x8xf32>
    %98 = vector.extract_strided_slice %58 {offsets = [3, 0], sizes = [1, 8], strides = [1, 1]} : vector<9x8xf32> to vector<1x8xf32>
    %99 = vector.shape_cast %98 : vector<1x8xf32> to vector<8xf32>
    %100 = vector.shape_cast %99 : vector<8xf32> to vector<1x1x8xf32>
    %101 = vector.broadcast %100 : vector<1x1x8xf32> to vector<8x8x8xf32>
    %102 = arith.mulf %53, %101 : vector<8x8x8xf32>
    %103 = arith.addf %97, %102 : vector<8x8x8xf32>
    %104 = vector.extract_strided_slice %58 {offsets = [6, 0], sizes = [1, 8], strides = [1, 1]} : vector<9x8xf32> to vector<1x8xf32>
    %105 = vector.shape_cast %104 : vector<1x8xf32> to vector<8xf32>
    %106 = vector.shape_cast %105 : vector<8xf32> to vector<1x1x8xf32>
    %107 = vector.broadcast %106 : vector<1x1x8xf32> to vector<8x8x8xf32>
    %108 = arith.mulf %57, %107 : vector<8x8x8xf32>
    %109 = arith.addf %103, %108 : vector<8x8x8xf32>
    %cst_20 = arith.constant 0.000000e+00 : f32
    %110 = vector.broadcast %cst_20 : f32 to vector<8x1x8xf32>
    %111 = vector.extract_strided_slice %109 {offsets = [0, 0, 0], sizes = [8, 7, 8], strides = [1, 1, 1]} : vector<8x8x8xf32> to vector<8x7x8xf32>
    %112 = tpu.concatenate %110, %111 in 1 : vector<8x1x8xf32>, vector<8x7x8xf32> -> vector<8x8x8xf32>
    %113 = arith.addf %75, %92 : vector<8x8x8xf32>
    %114 = arith.addf %113, %112 : vector<8x8x8xf32>
    %c0_21 = arith.constant 0 : index
    %c0_22 = arith.constant 0 : index
    %115 = vector.load %arg7[%c0_21, %c0_22] : memref<1x8xf32, #tpu.memory_space<vmem>>, vector<1x8xf32>
    %116 = vector.shape_cast %115 : vector<1x8xf32> to vector<1x1x8xf32>
    %117 = vector.broadcast %116 : vector<1x1x8xf32> to vector<8x8x8xf32>
    %118 = arith.addf %114, %117 : vector<8x8x8xf32>
    %cst_23 = arith.constant 0.000000e+00 : f32
    %119 = vector.broadcast %cst_23 : f32 to vector<8x8x8xf32>
    %120 = arith.maximumf %118, %119 : vector<8x8x8xf32>
    %121 = vector.shape_cast %120 : vector<8x8x8xf32> to vector<64x8xf32>
    %c0_24 = arith.constant 0 : index
    %c0_25 = arith.constant 0 : index
    %122 = vector.load %arg8[%c0_24, %c0_25] : memref<8x8xf32, #tpu.memory_space<vmem>>, vector<8x8xf32>
    %cst_26 = arith.constant dense<0.000000e+00> : vector<64x8xf32>
    %123 = tpu.matmul %121, %122, %cst_26 {dimension_numbers = #tpu.dot_dimension_numbers<[1], [0], [0], [1], [0, 0, 1, 1], [], []>} : vector<64x8xf32>, vector<8x8xf32>, vector<64x8xf32> -> vector<64x8xf32>
    %c0_27 = arith.constant 0 : index
    %c0_28 = arith.constant 0 : index
    %124 = vector.load %arg9[%c0_27, %c0_28] : memref<1x8xf32, #tpu.memory_space<vmem>>, vector<1x8xf32>
    %125 = vector.broadcast %124 : vector<1x8xf32> to vector<64x8xf32>
    %126 = arith.addf %123, %125 : vector<64x8xf32>
    %c0_29 = arith.constant 0 : index
    %c0_30 = arith.constant 0 : index
    %c0_31 = arith.constant 0 : index
    %127 = vector.load %arg10[%c0_29, %c0_30, %c0_31] : memref<1x64x8xf32, #tpu.memory_space<vmem>>, vector<1x64x8xf32>
    %128 = vector.shape_cast %127 : vector<1x64x8xf32> to vector<64x8xf32>
    %129 = vector.shape_cast %126 : vector<64x8xf32> to vector<1x64x8xf32>
    tpu.vector_store %arg10[%c0_29, %c0_30, %c0_31], %129 {strides = array<i32>} : memref<1x64x8xf32, #tpu.memory_space<vmem>>, vector<1x64x8xf32>,
    return
  }
  func.func @transform_0(%arg0: i32, %arg1: i32) -> (i32, i32, i32, i32) {
    %c0_i32 = arith.constant 0 : i32
    %c0_i32_0 = arith.constant 0 : i32
    %c0_i32_1 = arith.constant 0 : i32
    return %arg0, %arg1, %c0_i32, %c0_i32_0 : i32, i32, i32, i32
  }
  func.func @transform_1(%arg0: i32, %arg1: i32) -> (i32, i32, i32, i32) {
    %c16_i32 = arith.constant 16 : i32
    %0 = arith.muli %c16_i32, %arg1 : i32
    %c1_i32 = arith.constant 1 : i32
    %1 = arith.subi %0, %c1_i32 : i32
    %c0_i32 = arith.constant 0 : i32
    %2 = arith.maxsi %1, %c0_i32 : i32
    %c0_i32_0 = arith.constant 0 : i32
    %c0_i32_1 = arith.constant 0 : i32
    %c0_i32_2 = arith.constant 0 : i32
    return %arg0, %2, %c0_i32_0, %c0_i32_1 : i32, i32, i32, i32
  }
  func.func @transform_2(%arg0: i32, %arg1: i32) -> (i32, i32) {
    %c0_i32 = arith.constant 0 : i32
    %c0_i32_0 = arith.constant 0 : i32
    %c0_i32_1 = arith.constant 0 : i32
    return %c0_i32, %c0_i32_0 : i32, i32
  }
  func.func @transform_3(%arg0: i32, %arg1: i32) -> (i32, i32) {
    %c0_i32 = arith.constant 0 : i32
    %c0_i32_0 = arith.constant 0 : i32
    %c0_i32_1 = arith.constant 0 : i32
    return %c0_i32, %c0_i32_0 : i32, i32
  }
  func.func @transform_4(%arg0: i32, %arg1: i32) -> (i32, i32) {
    %c0_i32 = arith.constant 0 : i32
    %c0_i32_0 = arith.constant 0 : i32
    %c0_i32_1 = arith.constant 0 : i32
    return %c0_i32, %c0_i32_0 : i32, i32
  }
  func.func @transform_5(%arg0: i32, %arg1: i32) -> (i32, i32) {
    %c0_i32 = arith.constant 0 : i32
    %c0_i32_0 = arith.constant 0 : i32
    %c0_i32_1 = arith.constant 0 : i32
    return %c0_i32, %c0_i32_0 : i32, i32
  }
  func.func @transform_6(%arg0: i32, %arg1: i32) -> (i32, i32) {
    %c0_i32 = arith.constant 0 : i32
    %c0_i32_0 = arith.constant 0 : i32
    %c0_i32_1 = arith.constant 0 : i32
    return %c0_i32, %c0_i32_0 : i32, i32
  }
  func.func @transform_7(%arg0: i32, %arg1: i32) -> (i32, i32) {
    %c0_i32 = arith.constant 0 : i32
    %c0_i32_0 = arith.constant 0 : i32
    %c0_i32_1 = arith.constant 0 : i32
    return %c0_i32, %c0_i32_0 : i32, i32
  }
  func.func @transform_8(%arg0: i32, %arg1: i32) -> (i32, i32, i32) {
    %c0_i32 = arith.constant 0 : i32
    %c0_i32_0 = arith.constant 0 : i32
    return %arg0, %arg1, %c0_i32 : i32, i32, i32
  }
}

</mosaic_0001>

<bundles_post_ra>
// kernel: tpu_custom_call.1
= control target key start
LH: loop header
LB: loop body
LE: loop exit
PB: predicated region body
PF: predicated region fallthrough
CT: control target
= control target key end

     0   :  { %s1794_s27 = smov 0   ;;  %s1796_s28 = smov 0   ;;  %s2177_s0 = inlined_call_operand.vmem [shape: f32[2,16,8,8], index: 0, kind: input, shape index: {}]   ;;  %s2178_s1 = inlined_call_operand.vmem [shape: f32[2,16,8,8], index: 1, kind: input, shape index: {}]   ;;  %s2179_s2 = inlined_call_operand.vmem [shape: f32[4,8], index: 2, kind: input, shape index: {}]   ;;  %s2180_s3 = inlined_call_operand.vmem [shape: f32[1,8], index: 3, kind: input, shape index: {}]   ;;  %s2181_s4 = inlined_call_operand.vmem [shape: f32[9,8], index: 4, kind: input, shape index: {}]   ;;  %s2182_s5 = inlined_call_operand.vmem [shape: f32[1,8], index: 5, kind: input, shape index: {}]   ;;  %s2183_s6 = inlined_call_operand.vmem [shape: f32[8,8], index: 6, kind: input, shape index: {}]   ;;  %s2184_s7 = inlined_call_operand.vmem [shape: f32[1,8], index: 7, kind: input, shape index: {}]   ;;  %s2185_s8 = inlined_call_operand.vmem [shape: f32[2,64,8], index: 8, kind: output, shape index: {}]  }
   0x1   :  { %s1798_s29 = smov 0  }
   0x2 LB: > { %s30_s30 = sadd.s32 1, %s1740_s28  ;;  %p1508_p0 = scmp.ge.s32.totalorder %s1744_s29, 1  ;;  %s1744_s29 = sphi %s1798_s29, %s18_s29   ;;  %s1740_s28 = sphi %s1796_s28, %s2187_s28   ;;  %s1736_s27 = sphi %s1794_s27, %s2186_s27  }
   0x3   : > { %p32_p1 = scmp.ge.s32.totalorder %s30_s30, 2  ;;  %p314_p2 = scmp.lt.s32.totalorder %s1744_s29, 3 }
   0x5   : > { %s2189_s30 = smov (%p32_p1, %s30_s30), 0  ;;  %p315_p3 = pnand %p1508_p0, %p314_p2 }
   0x6   : > { %p369_p4 = scmp.lt.s32.totalorder (!%p315_p3), %s1736_s27, 1  ;;  %s1747_s15 = smov (!%p315_p3), 124  }
   0x7   : > { %318 = sbr.rel (%p315_p3) target bundleno = 592 (0x250), region = 52 }
   0xc   : > { %v1815_v0 = vld [vmem:[%s2179_s2] sm:$0xf]  ;;  %vm477_vm0 = vcmask 1043456   ;;  %s2191_s27 = smov (!%p369_p4, %s1736_s27), 1  ;;  %v1746_v1 = vmov 0.0   ;;  %vm428_vm1 = vcmask 31744   ;;  %v1025_v36 = vlaneseq }
   0xd   : > { %1617 = vmatprep.subr.msk.mxu0 %vm477_vm0, %v1815_v0  ;;  %1693 = vmatprep.subr.msk.mxu1 %vm477_vm0, %v1815_v0  ;;  %s1567_s11 = sshll.u32 %s2191_s27, 7  ;;  %vm1748_vm2 = vmmov 0   ;;  %v1926_v39 = vld [vmem:[%s2180_s3] ss:$0 sm:$0xff]  ;;  %vm1205_vm3 = vcmask 1040384   ;;  %vm1261_vm4 = vcmask 64512  }
   0xe   : > { %1618 = vmatpush3.msk.msra.mxu0 %vm477_vm0, %v1815_v0  ;;  %1694 = vmatpush3.msk.msra.mxu1 %vm477_vm0, %v1815_v0  ;;  %s1836_s14 = scalar_lea.vmem %s2177_s0, %s1567_s11  ;;  %s389_s18 = scalar_lea.vmem %s2178_s1, %s1567_s11  ;;  %v1921_v37 = vshrl.u32 %v1025_v36, 7  ;;  %v1935_v43 = vld [vmem:[%s2181_s4] sm:$0xff] }
   0xf   : > { %1643 = vmatprep.subr.msk.mxu1 %vm477_vm0, %v1815_v0  ;;  %1669 = vmatprep.subr.mxu0 %v1746_v1  ;;  %v406_v2 = vld [vmem:[%s1836_s14] sm:$0xff]  ;;  %v408_v3 = vld [vmem:[%s1836_s14 + $0x10] sm:$0xff]  ;;  %v407_v4 = vld [vmem:[%s1836_s14 + $0x8] sm:$0xff]  ;;  %s1569_s11 = sshll.u32 %s2191_s27, 6 }
  0x10   : > { %642 = vrot.lane.b32.xlu0 %v406_v2, %s1747_s15  ;;  %646 = vrot.lane.b32.xlu1 %v408_v3, %s1747_s15  ;;  %v409_v5 = vld [vmem:[%s1836_s14 + $0x18] sm:$0xff]  ;;  %v418_v6 = vld [vmem:[%s1836_s14 + $0x60] sm:$0xff]  ;;  %v1027_v42 = vsub.s32 1, %v1921_v37  ;;  %v1059_v44 = vsub.s32 7, %v1921_v37  ;;  %v1039_v47 = vsub.s32 4, %v1921_v37  ;;  %s402_s16 = scalar_lea.vmem %s2185_s8, %s1569_s11 }
  0x11   : > { %1619 = vmatprep.mubr.msk.f32.mxu0 %vm428_vm1, %v406_v2  ;;  %v410_v7 = vld [vmem:[%s1836_s14 + $0x20] sm:$0xff]  ;;  %v411_v8 = vld [vmem:[%s1836_s14 + $0x28] sm:$0xff]  ;;  %1637 = vmatprep.mubr.msk.f32.mxu1 %vm428_vm1, %v418_v6  ;;  %v420_v10 = vld [vmem:[%s1836_s14 + $0x70] sm:$0xff] }
  0x12   : > { %1620 = vmatmul.mubr.msk.f32.vlgmr.msra.gmra.mxu0 %vm428_vm1, %v407_v4  ;;  %v419_v9 = vld [vmem:[%s1836_s14 + $0x68] sm:$0xff]  ;;  %v412_v11 = vld [vmem:[%s1836_s14 + $0x30] sm:$0xff]  ;;  %v413_v12 = vld [vmem:[%s1836_s14 + $0x38] sm:$0xff]  ;;  %v1942_v50 = vrot.slane %v1935_v43, %v1027_v42  ;;  %v1946_v53 = vrot.slane %v1935_v43, %v1059_v44  ;;  %v1952_v56 = vrot.slane %v1935_v43, %v1039_v47 }
  0x13   : > { %1622 = vmatprep.mubr.msk.f32.mxu0 %vm428_vm1, %v408_v3  ;;  %1670 = vmatpush3.msk.msra.mxu0 %vm477_vm0, %v1815_v0  ;;  %v421_v13 = vld [vmem:[%s1836_s14 + $0x78] sm:$0xff]  ;;  %v414_v14 = vld [vmem:[%s1836_s14 + $0x40] sm:$0xff]  ;;  %v415_v15 = vld [vmem:[%s1836_s14 + $0x48] sm:$0xff] }
  0x14   : > { %644 = vrot.lane.b32.xlu0 %v407_v4, %s1747_s15  ;;  %648 = vrot.lane.b32.xlu1 %v409_v5, %s1747_s15  ;;  %v416_v16 = vld [vmem:[%s1836_s14 + $0x50] sm:$0xff]  ;;  %v417_v17 = vld [vmem:[%s1836_s14 + $0x58] sm:$0xff] }
  0x15   : > { %1638 = vmatmul.mubr.msk.f32.vlgmr.msra.gmra.mxu1 %vm428_vm1, %v419_v9  ;;  %v870_v18 = vld [vmem:[%s389_s18] sm:$0xff] }
  0x16   : > { %1623 = vmatmul.mubr.msk.f32.gmra.mxu0 %vm428_vm1, %v409_v5  ;;  %1640 = vmatprep.mubr.msk.f32.mxu1 %vm428_vm1, %v420_v10 }
  0x17   : > { %1625 = vmatprep.mubr.msk.f32.mxu0 %vm428_vm1, %v410_v7  ;;  %1644 = vmatpush3.msk.msra.mxu1 %vm477_vm0, %v1815_v0 }
  0x18   : > { %650 = vrot.lane.b32.xlu0 %v410_v7, %s1747_s15  ;;  %652 = vrot.lane.b32.xlu1 %v411_v8, %s1747_s15 }
  0x19   : > { %1641 = vmatmul.mubr.msk.f32.gmra.mxu1 %vm428_vm1, %v421_v13  ;;  %1674 = vmatprep.subr.mxu1 %v1746_v1 }
  0x1a   : > { %1626 = vmatmul.mubr.msk.f32.gmra.mxu0 %vm428_vm1, %v411_v8 }
  0x1b   : > { %1628 = vmatprep.mubr.msk.f32.mxu0 %vm428_vm1, %v412_v11 }
  0x1c   : > { %654 = vrot.lane.b32.xlu0 %v412_v11, %s1747_s15  ;;  %656 = vrot.lane.b32.xlu1 %v413_v12, %s1747_s15 }
  0x1e   : > { %1629 = vmatmul.mubr.msk.f32.gmra.mxu0 %vm428_vm1, %v413_v12 }
  0x1f   : > { %1631 = vmatprep.mubr.msk.f32.mxu0 %vm428_vm1, %v414_v14 }
  0x20   : > { %658 = vrot.lane.b32.xlu0 %v414_v14, %s1747_s15  ;;  %660 = vrot.lane.b32.xlu1 %v415_v15, %s1747_s15 }
  0x22   : > { %1632 = vmatmul.mubr.msk.f32.gmra.mxu0 %vm428_vm1, %v415_v15 }
  0x23   : > { %1634 = vmatprep.mubr.msk.f32.mxu0 %vm428_vm1, %v416_v16 }
  0x24   : > { %662 = vrot.lane.b32.xlu0 %v416_v16, %s1747_s15  ;;  %664 = vrot.lane.b32.xlu1 %v417_v17, %s1747_s15 }
  0x26   : > { %1635 = vmatmul.mubr.msk.f32.gmra.mxu0 %vm428_vm1, %v417_v17 }
  0x27   : > { %1671 = vmatprep.mubr.msk.f32.mxu0 %vm1748_vm2, %v1746_v1 }
  0x28   : > { %666 = vrot.lane.b32.xlu0 %v418_v6, %s1747_s15  ;;  %668 = vrot.lane.b32.xlu1 %v419_v9, %s1747_s15 }
  0x2a   : > { %1672 = vmatmul.mubr.msk.f32.vlgmr.msra.gmra.mxu0 %vm428_vm1, %v870_v18 }
  0x2c   : > { %670 = vrot.lane.b32.xlu0 %v420_v10, %s1747_s15  ;;  %672 = vrot.lane.b32.xlu1 %v421_v13, %s1747_s15 }
  0x30   : > { %947 = vrot.lane.b32.xlu0 %v870_v18, %s1747_s15 }
  0x82   : > { %v643_v19 = vpop.permute.xlu0 %642  ;;  %v647_v20 = vpop.permute.xlu1 %646 }
  0x83   : > { %1645 = vmatprep.mubr.msk.f32.mxu1 %vm428_vm1, %v643_v19 }
  0x86   : > { %v645_v21 = vpop.permute.xlu0 %644  ;;  %v649_v22 = vpop.permute.xlu1 %648 }
  0x87   : > { %1646 = vmatmul.mubr.msk.f32.vlgmr.msra.gmra.mxu1 %vm428_vm1, %v645_v21 }
  0x88   : > { %1675 = vmatpush3.msk.msra.mxu1 %vm477_vm0, %v1815_v0  ;;  %1648 = vmatprep.mubr.msk.f32.mxu1 %vm428_vm1, %v647_v20 }
  0x8a   : > { %v651_v23 = vpop.permute.xlu0 %650  ;;  %v653_v24 = vpop.permute.xlu1 %652 }
  0x8b   : > { %1649 = vmatmul.mubr.msk.f32.gmra.mxu1 %vm428_vm1, %v649_v22 }
  0x8c   : > { %1651 = vmatprep.mubr.msk.f32.mxu1 %vm428_vm1, %v651_v23 }
  0x8e   : > { %v655_v25 = vpop.permute.xlu0 %654  ;;  %v657_v26 = vpop.permute.xlu1 %656 }
  0x8f   : > { %1652 = vmatmul.mubr.msk.f32.gmra.mxu1 %vm428_vm1, %v653_v24 }
  0x90   : > { %1654 = vmatprep.mubr.msk.f32.mxu1 %vm428_vm1, %v655_v25 }
  0x92   : > { %v659_v27 = vpop.permute.xlu0 %658  ;;  %v661_v28 = vpop.permute.xlu1 %660 }
  0x93   : > { %1655 = vmatmul.mubr.msk.f32.gmra.mxu1 %vm428_vm1, %v657_v26 }
  0x94   : > { %1657 = vmatprep.mubr.msk.f32.mxu1 %vm428_vm1, %v659_v27 }
  0x96   : > { %v663_v29 = vpop.permute.xlu0 %662  ;;  %v665_v30 = vpop.permute.xlu1 %664 }
  0x97   : > { %1658 = vmatmul.mubr.msk.f32.gmra.mxu1 %vm428_vm1, %v661_v28 }
  0x98   : > { %1660 = vmatprep.mubr.msk.f32.mxu1 %vm428_vm1, %v663_v29 }
  0x9a   : > { %v667_v31 = vpop.permute.xlu0 %666  ;;  %v669_v32 = vpop.permute.xlu1 %668 }
  0x9b   : > { %1661 = vmatmul.mubr.msk.f32.gmra.mxu1 %vm428_vm1, %v665_v30 }
  0x9c   : > { %1663 = vmatprep.mubr.msk.f32.mxu1 %vm428_vm1, %v667_v31 }
  0x9e   : > { %v671_v33 = vpop.permute.xlu0 %670  ;;  %v673_v34 = vpop.permute.xlu1 %672 }
  0x9f   : > { %1664 = vmatmul.mubr.msk.f32.gmra.mxu1 %vm428_vm1, %v669_v32 }
  0xa0   : > { %1666 = vmatprep.mubr.msk.f32.mxu1 %vm428_vm1, %v671_v33 }
  0xa2   : > { %v948_v35 = vpop.permute.xlu0 %947 }
  0xa3   : > { %1667 = vmatmul.mubr.msk.f32.gmra.mxu1 %vm428_vm1, %v673_v34 }
  0xa4   : > { %1676 = vmatprep.mubr.msk.f32.mxu1 %vm1748_vm2, %v1746_v1 }
  0xa7   : > { %1677 = vmatmul.mubr.msk.f32.vlgmr.msra.gmra.mxu1 %vm428_vm1, %v948_v35 }
  0xd2   : > { %v1621_v38 = vpop.f32.mrf.mxu0 }
  0xd3   : > { %v1929_v40 = vadd.f32 %v1621_v38, %v1926_v39 }
  0xd4   : > { %v547_v41 = vpop.f32.mrf.mxu0 }
  0xd5   : > { %v627_v46 = vmax.f32 %v1929_v40, 0.0  ;;  %v548_v22 = vadd.f32 %v1926_v39, %v547_v41 }
  0xd6   : > { %v1624_v45 = vpop.f32.mrf.mxu0 }
  0xd7   : > { %v563_v48 = vadd.f32 %v1624_v45, %v1926_v39  ;;  %v1030_v55 = vmul.f32 %v1942_v50, %v627_v46  ;;  %v626_v33 = vmax.f32 %v548_v22, 0.0 }
  0xd8   : > { %v557_v49 = vpop.f32.mrf.mxu0 }
  0xd9   : > { %v629_v51 = vmax.f32 %v563_v48, 0.0  ;;  %v558_v52 = vadd.f32 %v1926_v39, %v557_v49 }
  0xda   : > { %v1627_v54 = vpop.f32.mrf.mxu0 }
  0xdb   : > { %v628_v57 = vmax.f32 %v558_v52, 0.0  ;;  %v573_v58 = vadd.f32 %v1627_v54, %v1926_v39  ;;  %v1062_v60 = vmul.f32 %v1946_v53, %v629_v51  ;;  %v1031_v1 = vmul.f32 %v1942_v50, %v629_v51 }
  0xdc   : > { %v567_v59 = vpop.f32.mrf.mxu0  ;;  %v1041_v51 = vmul.f32 %v1952_v56, %v626_v33 }
  0xdd   : > { %v1042_v61 = vmul.f32 %v1952_v56, %v628_v57  ;;  %v631_v62 = vmax.f32 %v573_v58, 0.0  ;;  %v568_v63 = vadd.f32 %v1926_v39, %v567_v59 }
  0xde   : > { %v1630_v0 = vpop.f32.mrf.mxu0 }
  0xdf   : > { %v1050_v2 = vadd.f32 %v1042_v61, %v1030_v55  ;;  %v630_v3 = vmax.f32 %v568_v63, 0.0  ;;  %v583_v4 = vadd.f32 %v1630_v0, %v1926_v39  ;;  %v1063_v7 = vmul.f32 %v1946_v53, %v631_v62  ;;  %v1253_v61 = vld [vmem:[%s2183_s6] sm:$0xff] }
  0xe0   : > { %v577_v5 = vpop.f32.mrf.mxu0  ;;  %v1032_v12 = vmul.f32 %v1942_v50, %v631_v62  ;;  %v1061_v55 = vmul.f32 %v1946_v53, %v627_v46  ;;  %1679 = vmatprep.subr.mxu0 %v1253_v61  ;;  %v1639_v62 = vpop.f32.mrf.mxu1 }
  0xe1   : > { %v1960_v6 = vadd.f32 %v1062_v60, %v1050_v2  ;;  %v1043_v8 = vmul.f32 %v1952_v56, %v630_v3  ;;  %v578_v9 = vadd.f32 %v1926_v39, %v577_v5  ;;  %v633_v10 = vmax.f32 %v583_v4, 0.0  ;;  %1680 = vmatpush3.msra.mxu0 %v1253_v61 }
  0xe2   : > { %v1633_v11 = vpop.f32.mrf.mxu0  ;;  %v607_v63 = vpop.f32.mrf.mxu1  ;;  %v1131_v4 = vsub.s32 0, %v1921_v37 }
  0xe3   : > { %v1051_v13 = vadd.f32 %v1043_v8, %v1031_v1  ;;  %v632_v14 = vmax.f32 %v578_v9, 0.0  ;;  %v593_v15 = vadd.f32 %v1633_v11, %v1926_v39  ;;  %v1064_v16 = vmul.f32 %v1946_v53, %v633_v10 }
  0xe4   : > { %v587_v17 = vpop.f32.mrf.mxu0  ;;  %v1033_v24 = vmul.f32 %v1942_v50, %v633_v10  ;;  %v1642_v0 = vpop.f32.mrf.mxu1  ;;  %v608_v10 = vadd.f32 %v1926_v39, %v607_v63 }
  0xe5   : > { %v1968_v18 = vadd.f32 %v1063_v7, %v1051_v13  ;;  %v1044_v19 = vmul.f32 %v1952_v56, %v632_v14  ;;  %v635_v20 = vmax.f32 %v593_v15, 0.0  ;;  %v588_v21 = vadd.f32 %v1926_v39, %v587_v17 }
  0xe6   : > { %v1636_v23 = vpop.f32.mrf.mxu0  ;;  %v617_v1 = vpop.f32.mrf.mxu1  ;;  %v1143_v7 = vsub.s32 3, %v1921_v37  ;;  %v1079_v13 = vsub.s32 2, %v1921_v37  ;;  %v2009_v14 = vrot.slane %v1935_v43, %v1131_v4 }
  0xe7   : > { %v1052_v25 = vadd.f32 %v1044_v19, %v1032_v12  ;;  %v634_v26 = vmax.f32 %v588_v21, 0.0  ;;  %v1975_v27 = vadd.f32 %v1636_v23, %v1926_v39  ;;  %v1065_v30 = vmul.f32 %v1946_v53, %v635_v20 }
  0xe8   : > { %v597_v28 = vpop.f32.mrf.mxu0  ;;  %v1034_v34 = vmul.f32 %v1942_v50, %v635_v20  ;;  %v1091_v12 = vsub.s32 5, %v1921_v37  ;;  %v2013_v19 = vrot.slane %v1935_v43, %v1143_v7  ;;  %v1163_v21 = vsub.s32 6, %v1921_v37 }
  0xe9   : > { %v1977_v29 = vadd.f32 %v1064_v16, %v1052_v25  ;;  %v1045_v31 = vmul.f32 %v1952_v56, %v634_v26  ;;  %v598_v32 = vadd.f32 %v1926_v39, %v597_v28  ;;  %v637_v38 = vmax.f32 %v1975_v27, 0.0 }
  0xea   : > { %v940_v35 = vpop.f32.mrf.mxu0  ;;  %v613_v16 = vadd.f32 %v1639_v62, %v1926_v39  ;;  %v618_v25 = vadd.f32 %v1926_v39, %v617_v1  ;;  %v2021_v27 = vrot.slane %v1935_v43, %v1091_v12  ;;  %v2024_v28 = vrot.slane %v1935_v43, %v1079_v13 }
  0xeb   : > { %v1053_v36 = vadd.f32 %v1045_v31, %v1033_v24  ;;  %v636_v41 = vmax.f32 %v598_v32, 0.0  ;;  %v941_v42 = vadd.f32 %v1926_v39, %v940_v35  ;;  %v1066_v47 = vmul.f32 %v1946_v53, %v637_v38 }
  0xec   : > { %v1673_v44 = vpop.f32.mrf.mxu0  ;;  %v638_v24 = vmax.f32 %v608_v10, 0.0  ;;  %v639_v31 = vmax.f32 %v613_v16, 0.0  ;;  %v623_v32 = vadd.f32 %v1642_v0, %v1926_v39 }
  0xed   : > { %v1985_v45 = vadd.f32 %v1065_v30, %v1053_v36  ;;  %v1046_v48 = vmul.f32 %v1952_v56, %v636_v41  ;;  %v944_v49 = vmax.f32 %v941_v42, 0.0  ;;  %v1035_v44 = vmul.f32 %v1942_v50, %v637_v38 }
  0xee   : > { %v1047_v42 = vmul.f32 %v1952_v56, %v638_v24 }
  0xef   : > { %v1054_v52 = vadd.f32 %v1046_v48, %v1034_v34  ;;  %v946_v54 = vmul.f32 0.0, %v944_v49  ;;  %v2029_v34 = vrot.slane %v1935_v43, %v1163_v21 }
  0xf0   : > { %v1055_v0 = vadd.f32 %v1047_v42, %v1035_v44 }
  0xf1   : > { %v1993_v57 = vadd.f32 %v1066_v47, %v1054_v52  ;;  %v1029_v58 = vmul.f32 %v1942_v50, %v946_v54  ;;  %v640_v47 = vmax.f32 %v618_v25, 0.0  ;;  %v1036_v54 = vmul.f32 %v1942_v50, %v639_v31  ;;  %v2046_v50 = vld [vmem:[%s2181_s4 + $0x8] ss:$0 sm:$0xff] }
  0xf3   : > { %v1049_v59 = vadd.f32 %v1041_v51, %v1029_v58  ;;  %v1048_v1 = vmul.f32 %v1952_v56, %v640_v47 }
  0xf5   : > { %v1996_v60 = vadd.f32 %v1061_v55, %v1049_v59  ;;  %v641_v55 = vmax.f32 %v623_v32, 0.0  ;;  %v1067_v59 = vmul.f32 %v1946_v53, %v639_v31 }
  0xf7   : > { %v2052_v7 = vmul.f32 %v1946_v53, %v641_v55  ;;  %v2057_v16 = vadd.f32 %v1067_v59, %v1055_v0 }
 0x147   : > { %v1647_v40 = vpop.f32.mrf.mxu1 }
 0x148   : > { %v778_v5 = vadd.f32 %v1647_v40, %v1926_v39 }
 0x149   : > { %v772_v2 = vpop.f32.mrf.mxu1 }
 0x14a   : > { %v852_v17 = vmax.f32 %v778_v5, 0.0  ;;  %v773_v61 = vadd.f32 %v1926_v39, %v772_v2 }
 0x14b   : > { %v1650_v46 = vpop.f32.mrf.mxu1 }
 0x14c   : > { %v788_v20 = vadd.f32 %v1650_v46, %v1926_v39  ;;  %v1134_v37 = vmul.f32 %v2009_v14, %v852_v17  ;;  %v1082_v49 = vmul.f32 %v2024_v28, %v852_v17  ;;  %v851_v10 = vmax.f32 %v773_v61, 0.0 }
 0x14d   : > { %v782_v3 = vpop.f32.mrf.mxu1  ;;  %v2062_v53 = vmul.f32 %v2046_v50, %v852_v17  ;;  %v2065_v24 = vmul.f32 %v2029_v34, %v852_v17 }
 0x14e   : > { %v783_v8 = vadd.f32 %v1926_v39, %v782_v3  ;;  %v854_v33 = vmax.f32 %v788_v20, 0.0  ;;  %v2059_v20 = vadd.f32 %v1048_v1, %v1036_v54  ;;  %v2077_v44 = vmul.f32 %v2013_v19, %v851_v10 }
 0x14f   : > { %v1653_v9 = vpop.f32.mrf.mxu1 }
 0x150   : > { %v853_v11 = vmax.f32 %v783_v8, 0.0  ;;  %v798_v51 = vadd.f32 %v1653_v9, %v1926_v39  ;;  %v1166_v43 = vmul.f32 %v2029_v34, %v854_v33  ;;  %v1114_v3 = vmul.f32 %v2046_v50, %v854_v33 }
 0x151   : > { %v792_v15 = vpop.f32.mrf.mxu1  ;;  %v1135_v2 = vmul.f32 %v2009_v14, %v854_v33  ;;  %v1083_v56 = vmul.f32 %v2024_v28, %v854_v33 }
 0x152   : > { %v793_v22 = vadd.f32 %v1926_v39, %v792_v15  ;;  %v1146_v26 = vmul.f32 %v2013_v19, %v853_v11  ;;  %v1094_v35 = vmul.f32 %v2021_v27, %v853_v11  ;;  %v856_v4 = vmax.f32 %v798_v51, 0.0 }
 0x153   : > { %v1656_v23 = vpop.f32.mrf.mxu1 }
 0x154   : > { %v855_v36 = vmax.f32 %v793_v22, 0.0  ;;  %v1154_v48 = vadd.f32 %v1146_v26, %v1134_v37  ;;  %v1102_v62 = vadd.f32 %v1094_v35, %v1082_v49  ;;  %v808_v8 = vadd.f32 %v1656_v23, %v1926_v39 }
 0x155   : > { %v802_v30 = vpop.f32.mrf.mxu1  ;;  %v1167_v23 = vmul.f32 %v2029_v34, %v856_v4  ;;  %v2073_v37 = vmul.f32 %v2021_v27, %v851_v10  ;;  %v1084_v49 = vmul.f32 %v2024_v28, %v856_v4 }
 0x156   : > { %v803_v58 = vadd.f32 %v1926_v39, %v802_v30  ;;  %v1147_v38 = vmul.f32 %v2013_v19, %v855_v36  ;;  %v1174_v40 = vadd.f32 %v1166_v43, %v1154_v48  ;;  %v1095_v46 = vmul.f32 %v2021_v27, %v855_v36 }
 0x157   : > { %v1659_v41 = vpop.f32.mrf.mxu1  ;;  %v1122_v11 = vadd.f32 %v1114_v3, %v1102_v62  ;;  %v1115_v30 = vmul.f32 %v2046_v50, %v856_v4  ;;  %v858_v31 = vmax.f32 %v808_v8, 0.0  ;;  %v1136_v48 = vmul.f32 %v2009_v14, %v856_v4 }
 0x158   : > { %v857_v9 = vmax.f32 %v803_v58, 0.0  ;;  %v1155_v12 = vadd.f32 %v1147_v38, %v1135_v2  ;;  %v1190_v21 = vrot.slane %v1174_v40, 7  ;;  %v1103_v22 = vadd.f32 %v1095_v46, %v1083_v56 }
 0x159   : > { %v812_v52 = vpop.f32.mrf.mxu1  ;;  %v818_v25 = vadd.f32 %v1659_v41, %v1926_v39  ;;  %v1215_v35 = vadd.f32 %v1122_v11, %v1960_v6  ;;  %v1116_v6 = vmul.f32 %v2046_v50, %v858_v31  ;;  %v1168_v58 = vmul.f32 %v2029_v34, %v858_v31 }
 0x15a   : > { %v813_v13 = vadd.f32 %v1926_v39, %v812_v52  ;;  %v1148_v32 = vmul.f32 %v2013_v19, %v857_v9  ;;  %v1175_v36 = vadd.f32 %v1167_v23, %v1155_v12  ;;  %v1207_v41 = vsel %vm1205_vm3, 0.0, %v1190_v21 }
 0x15b   : > { %v1662_v63 = vpop.f32.mrf.mxu1  ;;  %v1123_v47 = vadd.f32 %v1115_v30, %v1103_v22  ;;  %v1096_v51 = vmul.f32 %v2021_v27, %v857_v9  ;;  %v860_v52 = vmax.f32 %v818_v25, 0.0  ;;  %v2086_v61 = vadd.f32 %v1215_v35, %v1207_v41 }
 0x15c   : > { %v859_v17 = vmax.f32 %v813_v13, 0.0  ;;  %v1156_v43 = vadd.f32 %v1148_v32, %v1136_v48  ;;  %v1191_v62 = vrot.slane %v1175_v36, 7  ;;  %v828_v0 = vadd.f32 %v1662_v63, %v1926_v39 }
 0x15d   : > { %v822_v5 = vpop.f32.mrf.mxu1  ;;  %v2091_v40 = vadd.f32 %v1123_v47, %v1968_v18  ;;  %v1085_v46 = vmul.f32 %v2024_v28, %v858_v31  ;;  %v1104_v2 = vadd.f32 %v1096_v51, %v1084_v49  ;;  %v1137_v56 = vmul.f32 %v2009_v14, %v858_v31 }
 0x15e   : > { %v823_v33 = vadd.f32 %v1926_v39, %v822_v5  ;;  %v1097_v38 = vmul.f32 %v2021_v27, %v859_v17  ;;  %v1149_v3 = vmul.f32 %v2013_v19, %v859_v17  ;;  %v1117_v5 = vmul.f32 %v2046_v50, %v860_v52 }
 0x15f   : > { %v1665_v15 = vpop.f32.mrf.mxu1  ;;  %v1176_v10 = vadd.f32 %v1168_v58, %v1156_v43  ;;  %v1208_v12 = vsel %vm1205_vm3, 0.0, %v1191_v62  ;;  %v1169_v21 = vmul.f32 %v2029_v34, %v860_v52  ;;  %v862_v22 = vmax.f32 %v828_v0, 0.0 }
 0x160   : > { %v861_v59 = vmax.f32 %v823_v33, 0.0  ;;  %v838_v11 = vadd.f32 %v1665_v15, %v1926_v39  ;;  %v1105_v13 = vadd.f32 %v1097_v38, %v1085_v46  ;;  %v1157_v23 = vadd.f32 %v1149_v3, %v1137_v56 }
 0x161   : > { %v832_v26 = vpop.f32.mrf.mxu1  ;;  %v1124_v31 = vadd.f32 %v1116_v6, %v1104_v2  ;;  %v1086_v32 = vmul.f32 %v2024_v28, %v860_v52  ;;  %v1192_v35 = vrot.slane %v1176_v10, 7  ;;  %v1139_v49 = vmul.f32 %v2009_v14, %v862_v22 }
 0x162   : > { %v833_v54 = vadd.f32 %v1926_v39, %v832_v26  ;;  %v1150_v63 = vmul.f32 %v2013_v19, %v861_v59  ;;  %v1098_v25 = vmul.f32 %v2021_v27, %v861_v59  ;;  %v1138_v26 = vmul.f32 %v2009_v14, %v860_v52 }
 0x163   : > { %v1668_v42 = vpop.f32.mrf.mxu1  ;;  %v864_v17 = vmax.f32 %v838_v11, 0.0  ;;  %v1125_v47 = vadd.f32 %v1117_v5, %v1105_v13  ;;  %v1170_v6 = vmul.f32 %v2029_v34, %v862_v22  ;;  %v1087_v43 = vmul.f32 %v2024_v28, %v862_v22 }
 0x164   : > { %v863_v8 = vmax.f32 %v833_v54, 0.0  ;;  %v1158_v36 = vadd.f32 %v1150_v63, %v1138_v26  ;;  %v848_v41 = vadd.f32 %v1668_v42, %v1926_v39  ;;  %v1177_v54 = vadd.f32 %v1169_v21, %v1157_v23 }
 0x165   : > { %v842_v55 = vpop.f32.mrf.mxu1  ;;  %v1171_v42 = vmul.f32 %v2029_v34, %v864_v17  ;;  %v1140_v0 = vmul.f32 %v2009_v14, %v864_v17  ;;  %v1118_v2 = vmul.f32 %v2046_v50, %v862_v22  ;;  %v1119_v5 = vmul.f32 %v2046_v50, %v864_v17  ;;  %v1555_v22 = vld [vmem:[%s2182_s5] ss:$0 sm:$0xff] }
 0x166   : > { %v843_v4 = vadd.f32 %v1926_v39, %v842_v55  ;;  %v1151_v33 = vmul.f32 %v2013_v19, %v863_v8  ;;  %v1099_v48 = vmul.f32 %v2021_v27, %v863_v8  ;;  %v1106_v55 = vadd.f32 %v1098_v25, %v1086_v32 }
 0x167   : > { %v1017_v1 = vpop.f32.mrf.mxu1  ;;  %v866_v38 = vmax.f32 %v848_v41, 0.0  ;;  %v1217_v63 = vadd.f32 %v1124_v31, %v1977_v29  ;;  %v1224_v29 = vadd.f32 %v2091_v40, %v1208_v12  ;;  %v1238_v31 = vadd.f32 %v1555_v22, %v2086_v61 }
 0x168   : > { %v1018_v18 = vadd.f32 %v1926_v39, %v1017_v1  ;;  %v865_v30 = vmax.f32 %v843_v4, 0.0  ;;  %v1159_v58 = vadd.f32 %v1151_v33, %v1139_v49  ;;  %v1178_v39 = vadd.f32 %v1170_v6, %v1158_v36 }
 0x169   : > { %v1678_v9 = vpop.f32.mrf.mxu1  ;;  %v1107_v1 = vadd.f32 %v1099_v48, %v1087_v43  ;;  %v1193_v4 = vrot.slane %v1177_v54, 7  ;;  %v1239_v12 = vadd.f32 %v1555_v22, %v1224_v29 }
 0x16a   : > { %v1021_v15 = vmax.f32 %v1018_v18, 0.0  ;;  %v1152_v52 = vmul.f32 %v2013_v19, %v865_v30  ;;  %v1100_v46 = vmul.f32 %v2021_v27, %v865_v30  ;;  %v1179_v8 = vadd.f32 %v1171_v42, %v1159_v58 }
 0x16b   : > { %v1088_v9 = vmul.f32 %v2024_v28, %v864_v17  ;;  %v1126_v27 = vadd.f32 %v1118_v2, %v1106_v55  ;;  %v1194_v11 = vrot.slane %v1178_v39, 7  ;;  %v1210_v23 = vsel %vm1205_vm3, 0.0, %v1193_v4  ;;  %v1556_v39 = vld [vmem:[%s2184_s7] ss:$0 sm:$0xff] }
 0x16c   : > { %v1022_v51 = vmul.f32 0.0, %v1021_v15  ;;  %v1160_v56 = vadd.f32 %v1152_v52, %v1140_v0  ;;  %v1195_v25 = vrot.slane %v1179_v8, 7 }
 0x16d   : > { %v1108_v18 = vadd.f32 %v1100_v46, %v1088_v9  ;;  %v1211_v32 = vsel %vm1205_vm3, 0.0, %v1194_v11 }
 0x16e   : > { %v1081_v59 = vmul.f32 %v2024_v28, %v1022_v51  ;;  %v1133_v62 = vmul.f32 %v2009_v14, %v1022_v51  ;;  %v1209_v28 = vsel %vm1205_vm3, 0.0, %v1192_v35  ;;  %v1212_v17 = vsel %vm1205_vm3, 0.0, %v1195_v25 }
 0x16f   : > { %v1225_v15 = vadd.f32 %v1217_v63, %v1209_v28 }
 0x170   : > { %v1101_v3 = vadd.f32 %v2073_v37, %v1081_v59  ;;  %v1153_v19 = vadd.f32 %v2077_v44, %v1133_v62  ;;  %v1172_v37 = vmul.f32 %v2029_v34, %v866_v38  ;;  %v1127_v44 = vadd.f32 %v1119_v5, %v1107_v1 }
 0x171   : > { %v1120_v34 = vmul.f32 %v2046_v50, %v866_v38  ;;  %v1076_v50 = vadd.f32 %v2052_v7, %v2059_v20  ;;  %v1240_v61 = vadd.f32 %v1555_v22, %v1225_v15 }
 0x172   : > { %v1121_v10 = vadd.f32 %v2062_v53, %v1101_v3  ;;  %v1173_v14 = vadd.f32 %v2065_v24, %v1153_v19  ;;  %v1218_v53 = vadd.f32 %v1125_v47, %v1985_v45  ;;  %v1180_v24 = vadd.f32 %v1172_v37, %v1160_v56 }
 0x173   : > { %v1220_v33 = vadd.f32 %v1127_v44, %v2057_v16  ;;  %v1128_v45 = vadd.f32 %v1120_v34, %v1108_v18  ;;  %v1246_v47 = vmax.f32 %v1238_v31, 0.0  ;;  %v1247_v16 = vmax.f32 %v1239_v12, 0.0 }
 0x174   : > { %v1189_v13 = vrot.slane %v1173_v14, 7  ;;  %v1214_v21 = vadd.f32 %v1121_v10, %v1996_v60  ;;  %v1219_v60 = vadd.f32 %v1126_v27, %v1993_v57  ;;  %v1196_v35 = vrot.slane %v1180_v24, 7 }
 0x175   : > { %v1226_v36 = vadd.f32 %v1218_v53, %v1210_v23  ;;  %v1221_v41 = vadd.f32 %v1128_v45, %v1076_v50  ;;  %v1228_v54 = vadd.f32 %v1220_v33, %v1212_v17  ;;  %v1248_v7 = vmax.f32 %v1240_v61, 0.0 }
 0x176   : > { %v1206_v26 = vsel %vm1205_vm3, 0.0, %v1189_v13  ;;  %v1227_v48 = vadd.f32 %v1219_v60, %v1211_v32  ;;  %v1213_v49 = vsel %vm1205_vm3, 0.0, %v1196_v35 }
 0x177   : > { %v1222_v30 = vadd.f32 %v1214_v21, %v1206_v26  ;;  %v1241_v51 = vadd.f32 %v1555_v22, %v1226_v36  ;;  %v1229_v55 = vadd.f32 %v1221_v41, %v1213_v49  ;;  %v1243_v52 = vadd.f32 %v1555_v22, %v1228_v54 }
 0x178   : > { %v1242_v20 = vadd.f32 %v1555_v22, %v1227_v48 }
 0x179   : > { %v1237_v40 = vadd.f32 %v1555_v22, %v1222_v30  ;;  %v1249_v6 = vmax.f32 %v1241_v51, 0.0  ;;  %v1244_v58 = vadd.f32 %v1555_v22, %v1229_v55  ;;  %v1251_v59 = vmax.f32 %v1243_v52, 0.0 }
 0x17a   : > { %v1250_v43 = vmax.f32 %v1242_v20, 0.0 }
 0x17b   : > { %v1245_v57 = vmax.f32 %v1237_v40, 0.0  ;;  %v1252_v62 = vmax.f32 %v1244_v58, 0.0 }
 0x17d   : > { %1681 = vmatprep.mubr.msk.f32.mxu0 %vm1261_vm4, %v1245_v57 }
 0x17e   : > { %1682 = vmatmul.mubr.msk.f32.vlgmr.msra.gmra.mxu0 %vm1261_vm4, %v1246_v47 }
 0x17f   : > { %1684 = vmatprep.mubr.msk.f32.mxu0 %vm1261_vm4, %v1247_v16 }
 0x182   : > { %1685 = vmatmul.mubr.msk.f32.gmra.mxu0 %vm1261_vm4, %v1248_v7 }
 0x183   : > { %1687 = vmatprep.mubr.msk.f32.mxu0 %vm1261_vm4, %v1249_v6 }
 0x186   : > { %1688 = vmatmul.mubr.msk.f32.gmra.mxu0 %vm1261_vm4, %v1250_v43 }
 0x187   : > { %1690 = vmatprep.mubr.msk.f32.mxu0 %vm1261_vm4, %v1251_v59 }
 0x18a   : > { %1691 = vmatmul.mubr.msk.f32.gmra.mxu0 %vm1261_vm4, %v1252_v62 }
 0x23e   : > { %v1683_v42 = vpop.f32.mrf.mxu0 }
 0x23f   : > { %v1358_v38 = vadd.f32 %v1683_v42, %v1556_v39 }
 0x240   : > { %v1352_v0 = vpop.f32.mrf.mxu0 }
 0x241   : > { %1392 = vst.msk [vmem:[%s402_s16 + $0x8] sm:$0xff] %vm1261_vm4, %v1358_v38  ;;  %v1353_v1 = vadd.f32 %v1556_v39, %v1352_v0 }
 0x242   : > { %v1686_v46 = vpop.f32.mrf.mxu0 }
 0x243   : > { %1391 = vst.msk [vmem:[%s402_s16] sm:$0xff] %vm1261_vm4, %v1353_v1  ;;  %v1368_v3 = vadd.f32 %v1686_v46, %v1556_v39 }
 0x244   : > { %v1362_v19 = vpop.f32.mrf.mxu0 }
 0x245   : > { %1394 = vst.msk [vmem:[%s402_s16 + $0x18] sm:$0xff] %vm1261_vm4, %v1368_v3  ;;  %v1363_v4 = vadd.f32 %v1556_v39, %v1362_v19 }
 0x246   : > { %v1689_v2 = vpop.f32.mrf.mxu0 }
 0x247   : > { %1393 = vst.msk [vmem:[%s402_s16 + $0x10] sm:$0xff] %vm1261_vm4, %v1363_v4  ;;  %v1378_v5 = vadd.f32 %v1689_v2, %v1556_v39 }
 0x248   : > { %v1372_v56 = vpop.f32.mrf.mxu0 }
 0x249   : > { %1396 = vst.msk [vmem:[%s402_s16 + $0x28] sm:$0xff] %vm1261_vm4, %v1378_v5  ;;  %v1373_v8 = vadd.f32 %v1556_v39, %v1372_v56 }
 0x24a   : > { %v1692_v9 = vpop.f32.mrf.mxu0 }
 0x24b   : > { %1395 = vst.msk [vmem:[%s402_s16 + $0x20] sm:$0xff] %vm1261_vm4, %v1373_v8  ;;  %v1388_v10 = vadd.f32 %v1692_v9, %v1556_v39 }
 0x24c   : > { %v1382_v14 = vpop.f32.mrf.mxu0 }
 0x24d   : > { %1398 = vst.msk [vmem:[%s402_s16 + $0x38] sm:$0xff] %vm1261_vm4, %v1388_v10  ;;  %v1383_v63 = vadd.f32 %v1556_v39, %v1382_v14 }
 0x24f   : > { %1397 = vst.msk [vmem:[%s402_s16 + $0x30] sm:$0xff] %vm1261_vm4, %v1383_v63 }
 0x250 PF: > { %s18_s29 = sadd.s32 1, %s1744_s29   ;;  %s2186_s27 = smov %s1740_s28 }
 0x251   : > { %p15_p5 = scmp.ge.s32.totalorder %s18_s29, 4   ;;  %s2187_s28 = smov %s2189_s30 }
 0x253   :  { %17 = sbr.rel (!%p15_p5) target bundleno = 2 (0x2), region = 85 }

</bundles_post_ra>
